<compile_context>
chip_gen: v7x
topology: tpu7x:2x2x1
jax: 0.10.0
libtpu: 0.0.40
codegen_flags: <defaults>
</compile_context>

<pallas_src>
import functools
import math

import numpy as np
import jax
import jax.numpy as jnp
from jax import lax
from jax.experimental import pallas as pl
from jax.experimental.pallas import tpu as pltpu

_SQRT_HALF = 1.0 / math.sqrt(2.0)


def _ffn_kernel(x_ref, w1_ref, b1_ref, w2_ref, b2_ref, o_ref, *, compute_dtype):
    """Fused Linear -> exact GELU -> Linear on one (TM, D) row tile."""
    x = x_ref[...]                                               # (TM, D), fp32
    xc = x.astype(compute_dtype)                                 # bf16 into the MXU
    h = jnp.dot(xc, w1_ref[...], preferred_element_type=jnp.float32) + b1_ref[...]
    h = 0.5 * h * (1.0 + lax.erf(h * jnp.float32(_SQRT_HALF)))   # exact GELU, fp32 (EUP)
    y = jnp.dot(h.astype(compute_dtype), w2_ref[...], preferred_element_type=jnp.float32)
    o_ref[...] = (y + b2_ref[...]).astype(o_ref.dtype)           # lane-dense (TM, D) store


def feed_forward(x, w1, b1, w2, b2, *, block_rows=256, compute_dtype=jnp.bfloat16):
    """x: (..., d_model); w1: (d_model, ff_dim); w2: (ff_dim, d_model)."""
    orig_shape = x.shape
    D = orig_shape[-1]
    F = w1.shape[1]
    M = int(np.prod(orig_shape[:-1]))        # flatten all leading dims into rows
    x2 = x.reshape(M, D)

    # Row tile: full array if small, otherwise block_rows (kept a multiple of 8).
    TM = M if M <= block_rows else block_rows
    grid = (pl.cdiv(M, TM),)

    # Weights resident in VMEM across the whole grid, cast to bf16 (halves DMA/VMEM
    # footprint, 2-4x MXU throughput). Biases stay fp32.
    w1c = w1.astype(compute_dtype)
    w2c = w2.astype(compute_dtype)
    b1f = b1.reshape(1, F).astype(jnp.float32)
    b2f = b2.reshape(1, D).astype(jnp.float32)

    # Explicit scoped-VMEM budget: double-buffered activation tiles + weights + hidden.
    wbytes = jnp.dtype(compute_dtype).itemsize
    est = (2 * 2 * TM * D * 4                                   # x + out tiles, 2x buffered
           + 2 * ((D * F + F * D) * wbytes + (F + D) * 4)        # weights + biases
           + 2 * TM * F * 4)                                     # GELU intermediate headroom
    vmem_limit = int(min(64 * 2**20, max(4 * est, 8 * 2**20)))   # cap for v7x (64 MiB phys)

    row_spec = pl.BlockSpec((TM, D), lambda i: (i, 0))
    out = pl.pallas_call(
        functools.partial(_ffn_kernel, compute_dtype=compute_dtype),
        out_shape=jax.ShapeDtypeStruct((M, D), x.dtype),
        grid=grid,
        in_specs=[row_spec,
                  pl.BlockSpec((D, F), lambda i: (0, 0)),
                  pl.BlockSpec((1, F), lambda i: (0, 0)),
                  pl.BlockSpec((F, D), lambda i: (0, 0)),
                  pl.BlockSpec((1, D), lambda i: (0, 0))],
        out_specs=row_spec,
        compiler_params=pltpu.CompilerParams(
            dimension_semantics=("parallel",),
            vmem_limit_bytes=vmem_limit),
    )(x2, w1c, b1f, w2c, b2f)
    return out.reshape(orig_shape)


# ---------------- Pure-JAX fp32 reference (same semantics) for validation ----------------
def reference(x, w1, b1, w2, b2):
    h = x @ w1 + b1
    h = 0.5 * h * (1.0 + lax.erf(h / jnp.float32(math.sqrt(2.0))))   # exact GELU
    return h @ w2 + b2


if __name__ == "__main__":
    N, S, D, F = 2, 8, 32, 64   # batch, seq, d_model, ff_dim

    key = jax.random.PRNGKey(0)
    k = jax.random.split(key, 5)

    def lin(kw, kb, fan_in, fan_out):
        # Matches nn.Linear default init (uniform +/- 1/sqrt(fan_in)); weight stored as
        # (in, out) so x @ w == PyTorch's x @ W.T.
        bound = 1.0 / math.sqrt(fan_in)
        w = jax.random.uniform(kw, (fan_in, fan_out), jnp.float32, -bound, bound)
        b = jax.random.uniform(kb, (fan_out,), jnp.float32, -bound, bound)
        return w, b

    w1, b1 = lin(k[0], k[1], D, F)
    w2, b2 = lin(k[2], k[3], F, D)
    x = jax.random.normal(k[4], (N, S, D), jnp.float32)

    # block_rows=8 so the demo exercises row tiling (grid of 2 parallel steps, 8x32 tiles).
    out = feed_forward(x, w1, b1, w2, b2, block_rows=8)
    out = jax.block_until_ready(out)

    ref = reference(x, w1, b1, w2, b2)
    assert out.shape == (N, S, D)
    # Tolerance reflects bf16 matmul inputs (fp32 accumulation) vs the fp32 reference.
    if not bool(jnp.allclose(out, ref, atol=2e-2, rtol=2e-2)):
        raise AssertionError("Pallas output does not match reference")
    print("KERNEL_OK")
</pallas_src>

<mosaic_0001>
module attributes {stable_mosaic.version = 11 : i64} {
  func.func @_ffn_kernel(%arg0: i32, %arg1: memref<8x32xf32, #tpu.memory_space<vmem>>, %arg2: memref<32x64xbf16, #tpu.memory_space<vmem>>, %arg3: memref<1x64xf32, #tpu.memory_space<vmem>>, %arg4: memref<64x32xbf16, #tpu.memory_space<vmem>>, %arg5: memref<1x32xf32, #tpu.memory_space<vmem>>, %arg6: memref<8x32xf32, #tpu.memory_space<vmem>>) attributes {dimension_semantics = [#tpu.dimension_semantics<parallel>], iteration_bounds = array<i64: 2>, scalar_prefetch = 0 : i64, scratch_operands = 0 : i64, tpu.core_type = #tpu.core_type<tc>, window_params = [{transform_indices = @transform_0, window_bounds = array<i64: 8, 32>}, {pipeline_mode = #tpu.pipeline_mode<synchronous>, transform_indices = @transform_1, window_bounds = array<i64: 32, 64>}, {pipeline_mode = #tpu.pipeline_mode<synchronous>, transform_indices = @transform_2, window_bounds = array<i64: 1, 64>}, {pipeline_mode = #tpu.pipeline_mode<synchronous>, transform_indices = @transform_3, window_bounds = array<i64: 64, 32>}, {pipeline_mode = #tpu.pipeline_mode<synchronous>, transform_indices = @transform_4, window_bounds = array<i64: 1, 32>}, {transform_indices = @transform_5, window_bounds = array<i64: 8, 32>}]} {
    %c0 = arith.constant 0 : index
    %c0_0 = arith.constant 0 : index
    %0 = vector.load %arg1[%c0, %c0_0] : memref<8x32xf32, #tpu.memory_space<vmem>>, vector<8x32xf32>
    %1 = arith.truncf %0 : vector<8x32xf32> to vector<8x32xbf16>
    %c0_1 = arith.constant 0 : index
    %c0_2 = arith.constant 0 : index
    %2 = vector.load %arg2[%c0_1, %c0_2] : memref<32x64xbf16, #tpu.memory_space<vmem>>, vector<32x64xbf16>
    %cst = arith.constant dense<0.000000e+00> : vector<8x64xf32>
    %3 = tpu.matmul %1, %2, %cst {dimension_numbers = #tpu.dot_dimension_numbers<[1], [0], [0], [1], [0, 0, 1, 1], [], []>} : vector<8x32xbf16>, vector<32x64xbf16>, vector<8x64xf32> -> vector<8x64xf32>
    %c0_3 = arith.constant 0 : index
    %c0_4 = arith.constant 0 : index
    %4 = vector.load %arg3[%c0_3, %c0_4] : memref<1x64xf32, #tpu.memory_space<vmem>>, vector<1x64xf32>
    %5 = vector.broadcast %4 : vector<1x64xf32> to vector<8x64xf32>
    %6 = arith.addf %3, %5 : vector<8x64xf32>
    %cst_5 = arith.constant 5.000000e-01 : f32
    %7 = vector.broadcast %cst_5 : f32 to vector<8x64xf32>
    %8 = arith.mulf %7, %6 : vector<8x64xf32>
    %cst_6 = arith.constant 0.707106769 : f32
    %9 = vector.broadcast %cst_6 : f32 to vector<8x64xf32>
    %10 = arith.mulf %6, %9 : vector<8x64xf32>
    %11 = math.erf %10 : vector<8x64xf32>
    %cst_7 = arith.constant 1.000000e+00 : f32
    %12 = vector.broadcast %cst_7 : f32 to vector<8x64xf32>
    %13 = arith.addf %12, %11 : vector<8x64xf32>
    %14 = arith.mulf %8, %13 : vector<8x64xf32>
    %15 = arith.truncf %14 : vector<8x64xf32> to vector<8x64xbf16>
    %c0_8 = arith.constant 0 : index
    %c0_9 = arith.constant 0 : index
    %16 = vector.load %arg4[%c0_8, %c0_9] : memref<64x32xbf16, #tpu.memory_space<vmem>>, vector<64x32xbf16>
    %cst_10 = arith.constant dense<0.000000e+00> : vector<8x32xf32>
    %17 = tpu.matmul %15, %16, %cst_10 {dimension_numbers = #tpu.dot_dimension_numbers<[1], [0], [0], [1], [0, 0, 1, 1], [], []>} : vector<8x64xbf16>, vector<64x32xbf16>, vector<8x32xf32> -> vector<8x32xf32>
    %c0_11 = arith.constant 0 : index
    %c0_12 = arith.constant 0 : index
    %18 = vector.load %arg5[%c0_11, %c0_12] : memref<1x32xf32, #tpu.memory_space<vmem>>, vector<1x32xf32>
    %19 = vector.broadcast %18 : vector<1x32xf32> to vector<8x32xf32>
    %20 = arith.addf %17, %19 : vector<8x32xf32>
    %c0_13 = arith.constant 0 : index
    %c0_14 = arith.constant 0 : index
    %21 = vector.load %arg6[%c0_13, %c0_14] : memref<8x32xf32, #tpu.memory_space<vmem>>, vector<8x32xf32>
    tpu.vector_store %arg6[%c0_13, %c0_14], %20 {strides = array<i32>} : memref<8x32xf32, #tpu.memory_space<vmem>>, vector<8x32xf32>,
    return
  }
  func.func @transform_0(%arg0: i32) -> (i32, i32) {
    %c0_i32 = arith.constant 0 : i32
    %c0_i32_0 = arith.constant 0 : i32
    return %arg0, %c0_i32 : i32, i32
  }
  func.func @transform_1(%arg0: i32) -> (i32, i32) {
    %c0_i32 = arith.constant 0 : i32
    %c0_i32_0 = arith.constant 0 : i32
    %c0_i32_1 = arith.constant 0 : i32
    return %c0_i32, %c0_i32_0 : i32, i32
  }
  func.func @transform_2(%arg0: i32) -> (i32, i32) {
    %c0_i32 = arith.constant 0 : i32
    %c0_i32_0 = arith.constant 0 : i32
    %c0_i32_1 = arith.constant 0 : i32
    return %c0_i32, %c0_i32_0 : i32, i32
  }
  func.func @transform_3(%arg0: i32) -> (i32, i32) {
    %c0_i32 = arith.constant 0 : i32
    %c0_i32_0 = arith.constant 0 : i32
    %c0_i32_1 = arith.constant 0 : i32
    return %c0_i32, %c0_i32_0 : i32, i32
  }
  func.func @transform_4(%arg0: i32) -> (i32, i32) {
    %c0_i32 = arith.constant 0 : i32
    %c0_i32_0 = arith.constant 0 : i32
    %c0_i32_1 = arith.constant 0 : i32
    return %c0_i32, %c0_i32_0 : i32, i32
  }
  func.func @transform_5(%arg0: i32) -> (i32, i32) {
    %c0_i32 = arith.constant 0 : i32
    %c0_i32_0 = arith.constant 0 : i32
    return %arg0, %c0_i32 : i32, i32
  }
}

</mosaic_0001>

<bundles_post_ra>
// kernel: tpu_custom_call.1
= control target key start
LH: loop header
LB: loop body
LE: loop exit
PB: predicated region body
PF: predicated region fallthrough
CT: control target
= control target key end

     0   :  { %10 = vsyncpa [#allocation3], 0  ;;  %s773_s0 = inlined_call_operand.vmem [shape: f32[16,32], index: 0, kind: input, shape index: {}]   ;;  %s774_s1 = inlined_call_operand.vmem [shape: bf16[32,64], index: 1, kind: input, shape index: {}]   ;;  %s775_s2 = inlined_call_operand.vmem [shape: f32[1,64], index: 2, kind: input, shape index: {}]   ;;  %s776_s3 = inlined_call_operand.vmem [shape: bf16[64,32], index: 3, kind: input, shape index: {}]   ;;  %s777_s4 = inlined_call_operand.vmem [shape: f32[1,32], index: 4, kind: input, shape index: {}]   ;;  %s778_s5 = inlined_call_operand.hbm [shape: f32[16,32], index: 5, kind: output, shape index: {}]  }
   0x1   :  { %12 = vsyncpa [#allocation3 + $0x1], 0  ;;  %s647_s18 = smov 0   ;;  %s649_s19 = smov 0  }
   0x2   :  { %s651_s20 = smov 0   ;;  %s653_s21 = smov 0  }
   0x3 LB: > { %s668_s22 = sadd.s32 4294967295, %s612_s21   ;;  %s453_s23 = sadd.s32 4294967294, %s612_s21   ;;  %s612_s21 = sphi %s653_s21, %s784_s21   ;;  %s608_s20 = sphi %s651_s20, %s783_s20   ;;  %s604_s19 = sphi %s649_s19, %s782_s19   ;;  %s600_s18 = sphi %s647_s18, %s781_s18  }
   0x4   : > { %s672_s24 = sadd.s32 1, %s612_s21   ;;  %s135_s25 = sadd.s32 1, %s608_s20 }
   0x5   : > { %s132_s26 = ssub.s32 %s612_s21, %s672_s24  ;;  %p145_p0 = scmp.ne.s32.totalorder %s608_s20, %s604_s19 }
   0x6   : > { %p133_p1 = scmp.eq.s32.totalorder %s132_s26, 0  ;;  %p146_p2 = scmp.eq.s32.totalorder %s668_s22, 1 }
   0x7   : > { %p151_p3 = scmp.ne.s32.totalorder %s604_s19, %s600_s18  ;;  %p152_p4 = scmp.eq.s32.totalorder %s453_s23, 1 }
   0x8   : > { %s683_s27 = scalar_select %p133_p1, %s608_s20, %s135_s25  }
   0x9   : > { %p685_p5 = por %p146_p2, %p145_p0  ;;  %p689_p6 = por %p152_p4, %p151_p3 }
   0xa   : > { %p456_p7 = scmp.ge.s32.totalorder %s612_s21, 1  ;;  %p189_p8 = scmp.lt.s32.totalorder %s612_s21, 3 }
   0xc   : > { %p190_p9 = pnand %p456_p7, %p189_p8 }
   0xd   : > { %v542_v0 = vld [vmem:[%s774_s1] sm:$0xff] (!%p190_p9)   ;;  %v614_v1 = vmov (!%p190_p9), 0.0   ;;  %v543_v2 = vld [vmem:[%s774_s1 + $0x8] sm:$0xff] (!%p190_p9)   ;;  %vm615_vm0 = vmmov (!%p190_p9), 0   ;;  %p216_p10 = scmp.lt.s32.totalorder (!%p190_p9), %s668_s22, 1  ;;  %vm246_vm1 = vcmask (!%p190_p9), 261120  }
   0xe   : > { %193 = sbr.rel (%p190_p9) target bundleno = 489 (0x1e9), region = 40  ;;  %481 = vmatprep.subr.bf16.mxu0 (!%p190_p9), %v614_v1  ;;  %489 = vmatprep.subr.bf16.mxu1 (!%p190_p9), %v614_v1  ;;  %v544_v5 = vld [vmem:[%s776_s3] sm:$0xff] (!%p190_p9)   ;;  %v545_v6 = vld [vmem:[%s776_s3 + $0x8] sm:$0xff] (!%p190_p9)   ;;  %v546_v7 = vld [vmem:[%s776_s3 + $0x10] sm:$0xff] (!%p190_p9)   ;;  %vm335_vm2 = vcmask (!%p190_p9), 523264   ;;  %s213_s8 = sand.u32 (!%p190_p9), 1, %s604_s19  }
   0xf   : > { %482 = vmatpush3.bf16.msra.mxu0 (!%p190_p9), %v542_v0  ;;  %485 = vmatprep.mubr.msk.bf16.mxu0 (!%p190_p9), %vm615_vm0, %v614_v1  ;;  %v547_v8 = vld [vmem:[%s776_s3 + $0x18] sm:$0xff] (!%p190_p9)   ;;  %v459_v9 = vld [vmem:[%s775_s2] ss:$0 sm:$0xff] (!%p190_p9)  ;;  %s470_s12 = sshll.u32 (!%p190_p9), %s668_s22, 7  ;;  %s616_s25 = smov (!%p190_p9), [#allocation2]  }
  0x10   : > { %483 = vmatprep.subr.bf16.mxu0 (!%p190_p9), %v614_v1  ;;  %497 = vmatprep.mubr.msk.bf16.mxu1 (!%p190_p9), %vm615_vm0, %v614_v1  ;;  %v463_v21 = vld [vmem:[%s777_s4] ss:$0 sm:$0xff] (!%p190_p9)  ;;  %s730_s17 = scalar_lea.hbm (!%p190_p9), %s778_s5, %s470_s12  ;;  %s554_s26 = sshll.u32 (!%p190_p9), %s616_s25, 4  ;;  %s555_s26 = int_to_ptr.vmem [resolvable:$false] %s554_s26 }
  0x11   : > { %490 = vmatpush3.bf16.msra.mxu1 (!%p190_p9), %v544_v5  ;;  %s556_s30 = scalar_lea.vmem (!%p190_p9), %s555_s26, 256 }
  0x12   : > { %491 = vmatprep.subr.bf16.mxu1 (!%p190_p9), %v614_v1 }
  0x13   : > { %484 = vmatpush3.bf16.msra.mxu0 (!%p190_p9), %v543_v2 }
  0x15   : > { %s217_s9 = scalar_select %p216_p10, %s668_s22, 1  ;;  %492 = vmatpush3.bf16.msra.mxu1 %v545_v6 }
  0x16   : > { %493 = vmatprep.subr.bf16.mxu1 %v614_v1  ;;  %s381_s22 = scalar_lea.sflag [#allocation3], %s213_s8 }
  0x17   : > { %s458_s10 = sshll.u32 %s217_s9, 3  ;;  %s457_s9 = sshll.u32 %s213_s8, 3 }
  0x18   : > { %s219_s13 = scalar_lea.vmem %s773_s0, %s458_s10 }
  0x19   : > { %v221_v3 = vld [vmem:[%s219_s13] sm:$0xff]  ;;  %494 = vmatpush3.bf16.msra.mxu1 %v546_v7  ;;  %s215_s13 = scalar_lea.vmem [#allocation2], %s457_s9 }
  0x1a   : > { %v222_v4 = vpack.c.bf16 %v221_v3, %v221_v3  ;;  %495 = vmatprep.subr.bf16.mxu1 %v614_v1  ;;  %s394_s14 = sshll.u32 %s215_s13, 4  ;;  %s732_s14 = int_to_ptr.vmem [resolvable:$true] %s394_s14 }
  0x1b   : > { %s550_s23 = scalar_lea.vmem %s732_s14, 128  ;;  %p557_p0 = scmp.lt.s32.totalorder %s732_s14, %s555_s26 }
  0x1c   : > { %486 = vmatmul.mubr.msk.bf16.vlgmr.msra.gmra.mrb[0].mxu0 %vm246_vm1, %v222_v4  ;;  %p551_p11 = scmp.ne.s32.totalorder %s732_s14, %s550_s23  ;;  %p558_p1 = scmp.lt.s32.totalorder %s556_s30, %s550_s23 }
  0x1d   : > { %496 = vmatpush3.bf16.msra.mxu1 %v547_v8 }
  0x1e   : > { %p552_p12 = pnand %p551_p11, %p685_p5  ;;  %p559_p2 = por %p558_p1, %p557_p0 }
  0x20   : > { %p553_p13 = pneg %p552_p12 }
  0x22   : > { %p560_p3 = pnand %p559_p2, %p553_p13 }
  0xef   : > { %v284_v10 = vpop.f32.mrb[0].mxu0 }
  0xf0   : > { %v285_v11 = vadd.f32 %v459_v9, %v284_v10  ;;  %v487_v12 = vpop.f32.mrb[1].mxu0 }
  0xf1   : > { %v287_v13 = vpop.f32.mrb[2].mxu0 }
  0xf2   : > { %v291_v14 = vmul.f32 0.70710677, %v285_v11  ;;  %v488_v15 = vpop.f32.mrb[3].mxu0  ;;  %v290_v17 = vmul.f32 0.5, %v285_v11 }
  0xf4   : > { %548 = verf.f32 %v291_v14 }
  0xfe   : > { %v549_v16 = vpop.eup %548 }
  0xff   : > { %v293_v18 = vadd.f32 1.0, %v549_v16 }
 0x101   : > { %v294_v19 = vmul.f32 %v293_v18, %v290_v17 }
 0x103   : > { %v295_v20 = vpack.c.bf16 %v294_v19, %v294_v19 }
 0x105   : > { %498 = vmatmul.mubr.msk.bf16.vlgmr.msra.gmra.mrb[0].mxu1 %vm335_vm2, %v295_v20 }
 0x1d8   : > { %v373_v22 = vpop.f32.mrb[0].mxu1 }
 0x1d9   : > { %v374_v23 = vadd.f32 %v463_v21, %v373_v22  ;;  %v499_v24 = vpop.f32.mrb[1].mxu1 }
 0x1da   : > { %v376_v25 = vpop.f32.mrb[2].mxu1 }
 0x1db   : > { %v500_v26 = vpop.f32.mrb[3].mxu1  ;;  %379 = vst.msk [vmem:[%s215_s13] sm:$0xff] %vm246_vm1, %v374_v23 }
 0x1dc   : > { %563 = shalt.err (!%p560_p3)
}
 0x1dd   : > { %s564_s6 = scalar_lea.hbm %s730_s17, 128  ;;  %s568_s9 = scalar_lea.hbm %s778_s5, 256 }
 0x1de   : > { %p565_p4 = scmp.ne.s32.totalorder %s730_s17, %s564_s6  ;;  %p569_p9 = scmp.lt.u32.totalorder %s730_s17, %s778_s5 }
 0x1df   : > { %p570_p10 = scmp.lt.u32.totalorder %s568_s9, %s564_s6  ;;  %p572_p12 = scmp.lt.u32.totalorder %s564_s6, %s730_s17 }
 0x1e0   : > { %p566_p7 = pnand %p565_p4, %p685_p5 }
 0x1e1   : > { %p571_p11 = por %p570_p10, %p569_p9 }
 0x1e2   : > { %p567_p8 = pneg %p566_p7 }
 0x1e3   : > { %p573_p13 = por %p572_p12, %p571_p11 }
 0x1e5   : > { %p574_p0 = pnand %p573_p13, %p567_p8 }
 0x1e7   : > { %577 = shalt.err (!%p574_p0)
}
 0x1e8   : > { %501 = dma.vmem_to_hbm [thread:$0]  (%p685_p5), %s732_s14, 128, %s730_s17, %s381_s22  }
 0x1e9 PF: > { %p507_p1 = scmp.ge.s32.totalorder %s612_s21, 2  ;;  %s406_s12 = sand.u32 1, %s600_s18  }
 0x1ea   : > { %s407_s13 = scalar_lea.sflag [#allocation3], %s406_s12 }
 0x1eb   : > { %p504_p2 = pnand %p507_p1, %p689_p6 }
 0x1ed   : > { %595 = dma.done.wait (!%p504_p2), %s407_s13, 128  }
 0x1ee   : > { %597 = vsyncadd (!%p504_p2), %s407_s13, 4294967168  ;;  %p15_p3 = scmp.ge.s32.totalorder %s672_s24, 4   ;;  %s781_s18 = smov %s604_s19 }
 0x1ef   : > { %s782_s19 = smov %s608_s20  ;;  %s783_s20 = smov %s683_s27 }
 0x1f0   : > { %s784_s21 = smov %s672_s24  ;;  %17 = sbr.rel (!%p15_p3) target bundleno = 3 (0x3), region = 75 }
 0x1f7   :  { %412 = vsyncpa [#allocation3], 1 }
 0x1f8   :  { %414 = vsyncpa [#allocation3 + $0x1], 1 }

</bundles_post_ra>
